<compile_context>
chip_gen: v7x
topology: tpu7x:2x2x1
jax: 0.10.0
libtpu: 0.0.40
codegen_flags: <defaults>
</compile_context>

<pallas_src>
import jax
import jax.numpy as jnp
from jax.experimental import pallas as pl
from jax.experimental.pallas import tpu as pltpu


# ---------------------------------------------------------------------------
# Kernel body: compare a lane-dense tile of activations against the resident
# (1, tile_D) threshold row. exp() is already done in the wrapper.
# ---------------------------------------------------------------------------
def _jumprelu_kernel(x_ref, thr_ref, o_ref):
    # Matches PyTorch `input.to(param_dtype)` before the strict comparison.
    x = x_ref[...].astype(thr_ref.dtype)
    o_ref[...] = (x > thr_ref[...]).astype(o_ref.dtype)


# ---------------------------------------------------------------------------
# Tiling helpers
# ---------------------------------------------------------------------------
def _round_up(x, m):
    return ((x + m - 1) // m) * m


def _round_down(x, m):
    return (x // m) * m


def _device_kind():
    try:
        return jax.devices()[0].device_kind.lower()
    except Exception:
        return ""


def _tensorcores_per_chip(kind):
    # v4 / v7x expose 2 TensorCores per JAX device (megacore); v5e / v6e have 1.
    if ("v7" in kind) or ("7x" in kind) or ("v4" in kind):
        return 2
    return 1


def _max_tile_bytes(kind):
    # ~2 MiB tiles already hit ~85% of the v5e HBM roofline; v6e/v7x benefit from
    # larger tiles (amortize the ~0.35 us per-grid-step overhead against faster HBM).
    if ("v5e" in kind) or ("v5 lite" in kind) or ("v5lite" in kind):
        return 2 << 20
    return 4 << 20


def _choose_tiles(B, D, itemsize, n_tc, max_tile_bytes):
    """Pick (row_block, col_block). col_block == D means full-feature-dim tiles."""
    pack = max(8, 32 // max(itemsize, 1))       # sublane pack: f32→8, bf16→16, int8/fp8→32
    row_cap = _round_up(B, pack)
    bytes_per_full_row = D * itemsize

    if pack * bytes_per_full_row <= max_tile_bytes:
        # Full-D row blocks: one contiguous lane-dense DMA per tile.
        tb = min(_round_down(max_tile_bytes // bytes_per_full_row, pack), row_cap)
        tb = max(tb, pack)
        if n_tc >= 2:
            # Megacore: make the (parallel) row-step count even so both TensorCores
            # get equal work; never grows the tile beyond what the budget allowed.
            steps = pl.cdiv(B, tb)
            if steps % 2 == 1 and B > pack:
                tb = max(_round_up(pl.cdiv(B, steps + 1), pack), pack)
        return tb, D

    # Huge d_sae: also tile the feature dim in lane-dense chunks (multiples of 128)
    # so double-buffered in+out tiles stay near the ~1-4 MiB HBM sweet spot and never
    # exceed scoped/physical VMEM.
    tc = _round_down(max_tile_bytes // (pack * itemsize), 128)
    tc = max(tc, 512)
    tc = min(tc, _round_up(D, 128))
    tb = _round_down(max_tile_bytes // (tc * itemsize), pack)
    tb = max(min(tb, row_cap), pack)
    return tb, tc


# ---------------------------------------------------------------------------
# Public wrapper
# ---------------------------------------------------------------------------
def jumprelu_forward(x, log_jumprelu_threshold):
    """x: (..., D) activations; log_jumprelu_threshold: (D,) param (module dtype).
    Returns the (..., D) 0/1 mask in x.dtype (the module forward's exact output)."""
    D = x.shape[-1]
    assert log_jumprelu_threshold.shape == (D,)
    orig_shape = x.shape
    x2 = x.reshape(-1, D)
    B = x2.shape[0]

    # Hoisted: exp over the (D,) parameter runs once in XLA, not once per grid step.
    thr = jnp.exp(log_jumprelu_threshold).reshape(1, D)

    kind = _device_kind()
    n_tc = _tensorcores_per_chip(kind)
    tb, tc = _choose_tiles(B, D, x.dtype.itemsize, n_tc, _max_tile_bytes(kind))

    if tc == D:
        # 1-D row grid, full-feature-dim lane-dense tiles. Non-128-multiple D is fine
        # because the block dim equals the full array dim (no padding needed).
        grid = (pl.cdiv(B, tb),)
        in_specs = [
            pl.BlockSpec((tb, D), lambda i: (i, 0)),
            # Constant block index => fetched once and kept resident; single-buffered
            # so it does not waste a second D-sized VMEM copy.
            pl.BlockSpec((1, D), lambda i: (0, 0), pipeline_mode=pl.Buffered(1)),
        ]
        out_specs = pl.BlockSpec((tb, D), lambda i: (i, 0))
        dim_sems = ("parallel",)
    else:
        # 2-D grid for huge d_sae: columns outer, rows inner so the threshold chunk is
        # re-fetched only when the column block changes. All axes are independent.
        grid = (pl.cdiv(D, tc), pl.cdiv(B, tb))
        in_specs = [
            pl.BlockSpec((tb, tc), lambda j, i: (i, j)),
            pl.BlockSpec((1, tc), lambda j, i: (0, j)),
        ]
        out_specs = pl.BlockSpec((tb, tc), lambda j, i: (i, j))
        dim_sems = ("parallel", "parallel")

    itemsize = x.dtype.itemsize
    cost = pl.CostEstimate(
        flops=B * D,                      # one compare per element
        transcendentals=0,                # exp is hoisted to the wrapper
        bytes_accessed=2 * B * D * itemsize + D * thr.dtype.itemsize,
    )

    out = pl.pallas_call(
        _jumprelu_kernel,
        out_shape=jax.ShapeDtypeStruct((B, D), x.dtype),
        grid_spec=pltpu.PrefetchScalarGridSpec(
            num_scalar_prefetch=0,
            grid=grid,
            in_specs=in_specs,
            out_specs=out_specs,
        ),
        compiler_params=pltpu.CompilerParams(
            dimension_semantics=dim_sems,
            # Plenty of headroom for double-buffered in+out tiles on every generation
            # (v5e/v6e: 128 MiB physical; v7x: 64 MiB physical).
            vmem_limit_bytes=48 << 20,
        ),
        cost_estimate=cost,
    )(x2, thr)

    return out.reshape(orig_shape)


def jumprelu_reference(x, log_jumprelu_threshold):
    param_dtype = log_jumprelu_threshold.dtype
    thr = jnp.exp(log_jumprelu_threshold)
    return (x.astype(param_dtype) > thr).astype(x.dtype)


if __name__ == "__main__":
    key = jax.random.PRNGKey(0)
    k1, k2, k3 = jax.random.split(key, 3)

    # --- Test 1: f32 activations, 128-aligned d_sae ---------------------------------
    B, D = 16, 256
    x = jax.random.normal(k1, (B, D), dtype=jnp.float32)
    # Deterministic parameter init (module __init__ only fixes shape/dtype); thresholds ~ exp(-1).
    log_thr = 0.1 * jax.random.normal(k2, (D,), dtype=jnp.float32) - 1.0
    out = jax.block_until_ready(jumprelu_forward(x, log_thr))
    ref = jumprelu_reference(x, log_thr)
    assert out.shape == x.shape and out.dtype == x.dtype
    assert jnp.array_equal(out, ref), "mismatch vs reference (f32, aligned D)"

    # --- Test 2: bf16 activations, f32 param, ragged (non-128-multiple) d_sae --------
    # Exercises the no-pad/no-slice path and the input.to(param_dtype) upcast.
    B2, D2 = 16, 200
    x2 = jax.random.normal(k3, (B2, D2), dtype=jnp.bfloat16)
    log_thr2 = jnp.linspace(-2.0, 0.0, D2, dtype=jnp.float32)
    out2 = jax.block_until_ready(jumprelu_forward(x2, log_thr2))
    ref2 = jumprelu_reference(x2, log_thr2)
    assert out2.shape == x2.shape and out2.dtype == x2.dtype
    assert jnp.array_equal(out2, ref2), "mismatch vs reference (bf16, ragged D)"

    print("KERNEL_OK")
</pallas_src>

<mosaic_0001>
module attributes {stable_mosaic.version = 11 : i64} {
  func.func @_jumprelu_kernel(%arg0: i32, %arg1: memref<16x256xf32, #tpu.memory_space<vmem>>, %arg2: memref<1x256xf32, #tpu.memory_space<vmem>>, %arg3: memref<16x256xf32, #tpu.memory_space<vmem>>) attributes {dimension_semantics = [#tpu.dimension_semantics<parallel>], iteration_bounds = array<i64: 1>, scalar_prefetch = 0 : i64, scratch_operands = 0 : i64, tpu.core_type = #tpu.core_type<tc>, window_params = [{transform_indices = @transform_0, window_bounds = array<i64: 16, 256>}, {pipeline_mode = #tpu.pipeline_mode<synchronous>, transform_indices = @transform_1, window_bounds = array<i64: 1, 256>}, {transform_indices = @transform_2, window_bounds = array<i64: 16, 256>}]} {
    %c0 = arith.constant 0 : index
    %c0_0 = arith.constant 0 : index
    %0 = vector.load %arg1[%c0, %c0_0] : memref<16x256xf32, #tpu.memory_space<vmem>>, vector<16x256xf32>
    %c0_1 = arith.constant 0 : index
    %c0_2 = arith.constant 0 : index
    %1 = vector.load %arg2[%c0_1, %c0_2] : memref<1x256xf32, #tpu.memory_space<vmem>>, vector<1x256xf32>
    %2 = vector.broadcast %1 : vector<1x256xf32> to vector<16x256xf32>
    %3 = arith.cmpf ogt, %0, %2 : vector<16x256xf32>
    %4 = arith.extui %3 : vector<16x256xi1> to vector<16x256xi32>
    %5 = arith.sitofp %4 : vector<16x256xi32> to vector<16x256xf32>
    %c0_3 = arith.constant 0 : index
    %c0_4 = arith.constant 0 : index
    %6 = vector.load %arg3[%c0_3, %c0_4] : memref<16x256xf32, #tpu.memory_space<vmem>>, vector<16x256xf32>
    tpu.vector_store %arg3[%c0_3, %c0_4], %5 {strides = array<i32>} : memref<16x256xf32, #tpu.memory_space<vmem>>, vector<16x256xf32>,
    return
  }
  func.func @transform_0(%arg0: i32) -> (i32, i32) {
    %c0_i32 = arith.constant 0 : i32
    %c0_i32_0 = arith.constant 0 : i32
    return %arg0, %c0_i32 : i32, i32
  }
  func.func @transform_1(%arg0: i32) -> (i32, i32) {
    %c0_i32 = arith.constant 0 : i32
    %c0_i32_0 = arith.constant 0 : i32
    %c0_i32_1 = arith.constant 0 : i32
    return %c0_i32, %c0_i32_0 : i32, i32
  }
  func.func @transform_2(%arg0: i32) -> (i32, i32) {
    %c0_i32 = arith.constant 0 : i32
    %c0_i32_0 = arith.constant 0 : i32
    return %arg0, %c0_i32 : i32, i32
  }
}

</mosaic_0001>

<bundles_post_ra>
// kernel: tpu_custom_call.1
= control target key start
LH: loop header
LB: loop body
LE: loop exit
PB: predicated region body
PF: predicated region fallthrough
CT: control target
= control target key end

     0   :  { %7 = vsyncpa [#allocation3], 0  ;;  %s185_s0 = inlined_call_operand.hbm [shape: f32[16,256], index: 0, kind: input, shape index: {}]   ;;  %s186_s1 = inlined_call_operand.vmem [shape: f32[1,256], index: 1, kind: input, shape index: {}]   ;;  %s187_s2 = inlined_call_operand.hbm [shape: f32[16,256], index: 2, kind: output, shape index: {}]  }
   0x1   :  { %8 = vsyncpa [#allocation4], 0  ;;  %s132_s9 = smov [#allocation2]   ;;  %s84_s13 = scalar_lea.hbm %s185_s0, 512 }
   0x2   :  { %s14_s10 = sshll.u32 %s132_s9, 4  ;;  %p85_p0 = scmp.ne.s32.totalorder %s185_s0, %s84_s13  ;;  %s15_s10 = int_to_ptr.vmem [resolvable:$true] %s14_s10 }
   0x3   :  { %p88_p1 = scmp.lt.u32.totalorder %s84_s13, %s185_s0 }
   0x5   :  { %p90_p2 = pnand %p88_p1, %p85_p0 }
   0x7   :  { %93 = shalt.err (!%p90_p2)
}
   0x8   :  { %s94_s18 = scalar_lea.vmem %s15_s10, 512  ;;  %p99_p4 = scmp.lt.s32.totalorder %s15_s10, %s15_s10 }
   0x9   :  { %p95_p3 = scmp.ne.s32.totalorder %s15_s10, %s94_s18  ;;  %p100_p5 = scmp.lt.s32.totalorder %s94_s18, %s94_s18 }
   0xb   :  { %p101_p6 = por %p100_p5, %p99_p4 }
   0xd   :  { %p102_p7 = pnand %p101_p6, %p95_p3 }
   0xf   :  { %105 = shalt.err (!%p102_p7)
}
  0x10   :  { %s133_s19 = smov 256   ;;  %s134_s20 = smov 16  }
  0x11   :  { %20 = dma.hbm_to_vmem [thread:$0]  %s185_s0, 512, %s15_s10, [#allocation3], %s133_s19, %s133_s19, %s134_s20  }
  0x12   :  { %128 = dma.done.wait [#allocation3], 512  }
  0x13   :  { %129 = vsyncadd [#allocation3], 4294966784  ;;  %v32_v0 = vlaneseq  ;;  %v26_v4 = vld [vmem:[#allocation2] sm:$0xff]  ;;  %v27_v6 = vld [vmem:[#allocation2 + $0x8] sm:$0xff]  ;;  %s135_s25 = smov [#allocation5]   ;;  %v136_v11 = vmov 0.0  }
  0x14   :  { %v30_v5 = vld [vmem:[%s186_s1] sm:$0x3]  ;;  %s63_s26 = sshll.u32 %s135_s25, 4  ;;  %v28_v9 = vld [vmem:[#allocation2 + $0x10] sm:$0xff]  ;;  %v29_v10 = vld [vmem:[#allocation2 + $0x18] sm:$0xff]  ;;  %s64_s26 = int_to_ptr.vmem [resolvable:$true] %s63_s26 }
  0x15   :  { %v33_v1 = vshrl.u32 %v32_v0, 7  ;;  %s106_s0 = scalar_lea.vmem %s64_s26, 512  ;;  %p111_p9 = scmp.lt.s32.totalorder %s64_s26, %s64_s26 }
  0x16   :  { %p107_p8 = scmp.ne.s32.totalorder %s64_s26, %s106_s0  ;;  %p112_p10 = scmp.lt.s32.totalorder %s106_s0, %s106_s0 }
  0x17   :  { %v34_v2 = vsub.s32 0, %v33_v1  ;;  %v38_v3 = vsub.s32 1, %v33_v1 }
  0x18   :  { %p113_p11 = por %p112_p10, %p111_p9 }
  0x19   :  { %v35_v7 = vrot.slane %v30_v5, %v34_v2  ;;  %v39_v8 = vrot.slane %v30_v5, %v38_v3 }
  0x1a   :  { %p114_p12 = pnand %p113_p11, %p107_p8 }
  0x1b   :  { %vm42_vm0 = vcmp.gt.f32.partialorder %v26_v4, %v35_v7  ;;  %vm43_vm1 = vcmp.gt.f32.partialorder %v27_v6, %v39_v8  ;;  %vm44_vm2 = vcmp.gt.f32.partialorder %v28_v9, %v35_v7  ;;  %vm45_vm3 = vcmp.gt.f32.partialorder %v29_v10, %v39_v8 }
  0x1c   :  { %v75_v12 = vsel %vm42_vm0, 1.0, %v136_v11  ;;  %v76_v13 = vsel %vm43_vm1, 1.0, %v136_v11  ;;  %v77_v14 = vsel %vm44_vm2, 1.0, %v136_v11  ;;  %v78_v15 = vsel %vm45_vm3, 1.0, %v136_v11 }
  0x1d   :  { %54 = vst [vmem:[#allocation5] sm:$0xff] %v75_v12  ;;  %55 = vst [vmem:[#allocation5 + $0x8] sm:$0xff] %v76_v13 }
  0x1e   :  { %56 = vst [vmem:[#allocation5 + $0x10] sm:$0xff] %v77_v14  ;;  %57 = vst [vmem:[#allocation5 + $0x18] sm:$0xff] %v78_v15 }
  0x1f   :  { %117 = shalt.err (!%p114_p12)
}
  0x20   :  { %s118_s28 = scalar_lea.hbm %s187_s2, 512 }
  0x21   :  { %p119_p13 = scmp.ne.s32.totalorder %s187_s2, %s118_s28  ;;  %p122_p0 = scmp.lt.u32.totalorder %s118_s28, %s187_s2 }
  0x23   :  { %p124_p1 = pnand %p122_p0, %p119_p13 }
  0x25   :  { %127 = shalt.err (!%p124_p1)
}
  0x26   :  { %69 = dma.vmem_to_hbm [thread:$0]  %s64_s26, 512, %s187_s2, [#allocation4], %s133_s19, %s133_s19, %s134_s20  }
  0x27   :  { %130 = dma.done.wait [#allocation4], 512  }
  0x28   :  { %131 = vsyncadd [#allocation4], 4294966784 }
  0x29   :  { %73 = vsyncpa [#allocation3], 1 }
  0x2a   :  { %74 = vsyncpa [#allocation4], 1 }

</bundles_post_ra>
